<compile_context>
chip_gen: v5e
topology: v5e:2x2
jax: 0.10.0
libtpu: 0.0.40
codegen_flags: <defaults>
</compile_context>

<pallas_src>
import functools

import jax
import jax.numpy as jnp
from jax.experimental import pallas as pl
from jax.experimental.pallas import tpu as pltpu

LANE = 128


def _round_up(x, m):
    return ((x + m - 1) // m) * m


def _pick_tile(dim_p, cap):
    """Largest multiple of 128 <= cap that divides dim_p (dim_p is a 128-multiple)."""
    best = LANE
    t = LANE
    while t <= min(dim_p, cap):
        if dim_p % t == 0:
            best = t
        t += LANE
    return best


def _chip_caps():
    """Return (vmem_budget_bytes, batch_tile_cap) for the current TPU generation."""
    vmem_cap = None
    try:
        vmem_cap = int(pltpu.get_tpu_info().vmem_capacity_bytes)
    except Exception:
        vmem_cap = None
    kind = ""
    try:
        kind = jax.devices()[0].device_kind.lower()
    except Exception:
        pass
    if vmem_cap is None:
        vmem_cap = 64 * 2**20 if "v7" in kind else 128 * 2**20
    if "v7" in kind or vmem_cap <= 64 * 2**20:
        # v7x: 64 MiB physical VMEM per TC; leave headroom for internal scratch.
        budget = min(vmem_cap, 64 * 2**20) - 16 * 2**20
        return max(budget, 16 * 2**20), 256
    if "v6" in kind:
        return 100 * 2**20, 512     # v6e: 128 MiB VMEM, larger batch tiles pay off
    return 96 * 2**20, 256          # v5e & others (128 MiB VMEM, keep tb <= 256)


def _pick_batch_tile(B, tb_cap):
    if B <= tb_cap:
        # Aim for >=4 grid steps when the batch allows it: pipelines the x-tile
        # DMA with compute and lets ("parallel",) shard across v7x's two TCs.
        tb = max(16, _round_up(pl.cdiv(B, 4), 16))     # multiple of 16 (bf16 packing)
        tb = min(tb, _round_up(B, 16), tb_cap)
    else:
        tb = tb_cap
    return tb


# ---------------------------------------------------------------------------
# Kernels
# ---------------------------------------------------------------------------

def _mlp_resident_kernel(x_ref, w1_ref, b1_ref, w2_ref, b2_ref, o_ref):
    # Layer 1: (tb, Dp) bf16 @ (Dp, Hp) bf16 -> f32 accumulation on the MXU.
    h = jnp.dot(x_ref[...], w1_ref[...], preferred_element_type=jnp.float32)
    h = jnp.maximum(h + b1_ref[...], 0.0)          # bias + ReLU in f32 (VPU)
    # Layer 2: re-cast activation to bf16 for the MXU, accumulate in f32.
    y = jnp.dot(h.astype(jnp.bfloat16), w2_ref[...],
                preferred_element_type=jnp.float32)
    o_ref[...] = (y + b2_ref[...]).astype(o_ref.dtype)


def _matmul_bias_kernel(x_ref, w_ref, b_ref, o_ref, acc_ref, *, relu):
    # Canonical K-streamed matmul with f32 accumulator and fused epilogue.
    k = pl.program_id(2)

    @pl.when(k == 0)
    def _init():
        acc_ref[...] = jnp.zeros_like(acc_ref)

    acc_ref[...] += jnp.dot(x_ref[...], w_ref[...],
                            preferred_element_type=jnp.float32)

    @pl.when(k == pl.num_programs(2) - 1)
    def _finalize():
        y = acc_ref[...] + b_ref[...]
        if relu:
            y = jnp.maximum(y, 0.0)
        o_ref[...] = y.astype(o_ref.dtype)


# ---------------------------------------------------------------------------
# pallas_call wrappers
# ---------------------------------------------------------------------------

def _resident_call(x_p, w1_p, b1_p, w2_p, b2_p, tb, out_dtype, vmem_limit,
                   cost, single_buffer_weights):
    Bp, Dp = x_p.shape
    Hp = w1_p.shape[1]
    Op = w2_p.shape[1]
    # Constant-index weights/biases only need one VMEM buffer each.
    wkw = {"pipeline_mode": pl.Buffered(1)} if single_buffer_weights else {}
    return pl.pallas_call(
        _mlp_resident_kernel,
        out_shape=jax.ShapeDtypeStruct((Bp, Op), out_dtype),
        grid=(Bp // tb,),
        in_specs=[
            pl.BlockSpec((tb, Dp), lambda i: (i, 0)),          # x batch tile
            pl.BlockSpec((Dp, Hp), lambda i: (0, 0), **wkw),   # W1 resident
            pl.BlockSpec((1, Hp), lambda i: (0, 0), **wkw),    # b1 resident
            pl.BlockSpec((Hp, Op), lambda i: (0, 0), **wkw),   # W2 resident
            pl.BlockSpec((1, Op), lambda i: (0, 0), **wkw),    # b2 resident
        ],
        out_specs=pl.BlockSpec((tb, Op), lambda i: (i, 0)),
        compiler_params=pltpu.CompilerParams(
            dimension_semantics=("parallel",),
            vmem_limit_bytes=vmem_limit),
        cost_estimate=cost,
    )(x_p, w1_p, b1_p, w2_p, b2_p)


def _streamed_matmul(x_p, w_p, b_p, out_dtype, relu, tm, vmem_budget):
    Mp, Kp = x_p.shape
    Np = w_p.shape[1]
    tn = _pick_tile(Np, 512)
    tk = _pick_tile(Kp, 512)
    out_bytes = jnp.dtype(out_dtype).itemsize
    block_bytes = (2 * tm * tk * 2 + 2 * tk * tn * 2 + 2 * tn * 4
                   + tm * tn * 4 + 2 * tm * tn * out_bytes)
    vmem_limit = int(min(vmem_budget, max(8 * 2**20, int(1.5 * block_bytes))))
    cost = pl.CostEstimate(
        flops=2 * Mp * Kp * Np, transcendentals=0,
        bytes_accessed=(x_p.size * 2 + w_p.size * 2 + b_p.size * 4
                        + Mp * Np * out_bytes))
    return pl.pallas_call(
        functools.partial(_matmul_bias_kernel, relu=relu),
        out_shape=jax.ShapeDtypeStruct((Mp, Np), out_dtype),
        grid=(Mp // tm, Np // tn, Kp // tk),
        in_specs=[
            pl.BlockSpec((tm, tk), lambda i, j, k: (i, k)),
            pl.BlockSpec((tk, tn), lambda i, j, k: (k, j)),
            pl.BlockSpec((1, tn), lambda i, j, k: (0, j)),
        ],
        out_specs=pl.BlockSpec((tm, tn), lambda i, j, k: (i, j)),
        scratch_shapes=[pltpu.VMEM((tm, tn), jnp.float32)],
        compiler_params=pltpu.CompilerParams(
            dimension_semantics=("parallel", "parallel", "arbitrary"),
            vmem_limit_bytes=vmem_limit),
        cost_estimate=cost,
    )(x_p, w_p, b_p)


# ---------------------------------------------------------------------------
# Public API
# ---------------------------------------------------------------------------

def make_ddp_overlap_forward(w1, b1, w2, b2, *, force_streamed=False):
    """Build forward(x) for DDPOverlap(Linear -> ReLU -> Linear).

    Params are padded to 128-lane multiples and cast to bf16 ONCE here
    (hoisted out of the per-call path).  Padded lanes are zero and contribute
    nothing to any dot product, so the math is exact (in bf16/f32-acc numerics).
    """
    w1 = jnp.asarray(w1)
    w2 = jnp.asarray(w2)
    b1 = jnp.asarray(b1).reshape(1, -1)
    b2 = jnp.asarray(b2).reshape(1, -1)
    Din, H = w1.shape
    Dout = w2.shape[1]
    assert w2.shape[0] == H and b1.shape[1] == H and b2.shape[1] == Dout

    Dp = _round_up(Din, LANE)
    Hp = _round_up(H, LANE)
    Op = _round_up(Dout, LANE)

    w1_p = jnp.zeros((Dp, Hp), jnp.bfloat16).at[:Din, :H].set(w1.astype(jnp.bfloat16))
    w2_p = jnp.zeros((Hp, Op), jnp.bfloat16).at[:H, :Dout].set(w2.astype(jnp.bfloat16))
    b1_p = jnp.zeros((1, Hp), jnp.float32).at[:, :H].set(b1.astype(jnp.float32))
    b2_p = jnp.zeros((1, Op), jnp.float32).at[:, :Dout].set(b2.astype(jnp.float32))
    # TODO(synk): on v7x, fp8(e4m3) weights with per-channel scales would halve
    # weight DMA/VMEM further (v7x MXU has fp8, no int8 path); not done here.

    vmem_budget, tb_cap = _chip_caps()

    # Resident path keeps both weight matrices + biases in VMEM across batch
    # steps; otherwise stream K/N tiles (two matmul calls, f32 accumulator).
    resident_weight_bytes = (Dp * Hp + Hp * Op) * 2 + (Hp + Op) * 4
    use_resident = (not force_streamed) and (
        resident_weight_bytes <= 0.45 * vmem_budget)

    def forward(x):
        B, Din_x = x.shape
        assert Din_x == Din, "input feature dim mismatch"
        out_dtype = x.dtype
        out_bytes = jnp.dtype(out_dtype).itemsize

        tb = _pick_batch_tile(B, tb_cap)
        Bp = _round_up(B, tb)

        # Avoid an extra HBM round-trip when x is already aligned: just cast.
        if Bp == B and Dp == Din:
            x_p = x.astype(jnp.bfloat16)
        else:
            x_p = jnp.zeros((Bp, Dp), jnp.bfloat16).at[:B, :Din].set(
                x.astype(jnp.bfloat16))

        if use_resident:
            # Honest VMEM accounting: double-buffered x tiles, weights/biases
            # (counted double so the fallback path also fits), the f32
            # intermediate h, and double-buffered output tiles; 1.5x headroom,
            # capped at the per-generation budget.
            block_bytes = (2 * tb * Dp * 2
                           + 2 * (Dp * Hp + Hp * Op) * 2
                           + 2 * (Hp + Op) * 4
                           + tb * Hp * 4
                           + 2 * tb * Op * out_bytes)
            vmem_limit = int(min(vmem_budget,
                                 max(8 * 2**20, int(1.5 * block_bytes))))
            cost = pl.CostEstimate(
                flops=2 * Bp * Dp * Hp + 2 * Bp * Hp * Op,
                transcendentals=0,
                bytes_accessed=(x_p.size * 2 + (Dp * Hp + Hp * Op) * 2
                                + (Hp + Op) * 4 + Bp * Op * out_bytes))
            try:
                out_p = _resident_call(x_p, w1_p, b1_p, w2_p, b2_p, tb,
                                       out_dtype, vmem_limit, cost,
                                       single_buffer_weights=True)
            except Exception:
                # pl.Buffered(1) not accepted on this toolchain: fall back to
                # default (double-buffered) pipelining for the constant inputs.
                out_p = _resident_call(x_p, w1_p, b1_p, w2_p, b2_p, tb,
                                       out_dtype, vmem_limit, cost,
                                       single_buffer_weights=False)
        else:
            # K/N-streamed path for weights too large to keep resident
            # (required for production-size layers on v7x's 64 MiB VMEM).
            h_p = _streamed_matmul(x_p, w1_p, b1_p, jnp.bfloat16, relu=True,
                                   tm=tb, vmem_budget=vmem_budget)
            out_p = _streamed_matmul(h_p, w2_p, b2_p, out_dtype, relu=False,
                                     tm=tb, vmem_budget=vmem_budget)

        # Padded rows (B..Bp) hold relu(b1)@W2 + b2, not zeros: always slice.
        return out_p[:B, :Dout]

    return forward


def ddp_overlap_forward(x, w1, b1, w2, b2):
    """One-shot convenience wrapper (pads/casts params per call; prefer the factory)."""
    return make_ddp_overlap_forward(w1, b1, w2, b2)(x)


def reference_forward(x, w1, b1, w2, b2):
    # Mirror the kernel's bf16-input / f32-accumulation numerics.
    xb = x.astype(jnp.bfloat16)
    h = jnp.dot(xb, w1.astype(jnp.bfloat16),
                preferred_element_type=jnp.float32) + b1.reshape(1, -1)
    h = jnp.maximum(h, 0.0)
    return jnp.dot(h.astype(jnp.bfloat16), w2.astype(jnp.bfloat16),
                   preferred_element_type=jnp.float32) + b2.reshape(1, -1)


if __name__ == "__main__":
    # TODO(synk): dist.broadcast of params at init and the async all_reduce /
    # grad.div_(world_size) gradient hooks are backward-pass training
    # collectives with no role in the forward pass; not implemented here.
    key = jax.random.PRNGKey(0)
    (k_x, k_w1, k_b1, k_w2, k_b2,
     k_x2, k_w3, k_b3, k_w4, k_b4) = jax.random.split(key, 10)

    # Wrapped module: Linear(32->64) -> ReLU -> Linear(64->32), batch=8.
    B, Din, H, Dout = 8, 32, 64, 32
    x = jax.random.normal(k_x, (B, Din), dtype=jnp.float32)
    w1 = jax.random.normal(k_w1, (Din, H), dtype=jnp.float32) * 0.1
    b1 = jax.random.normal(k_b1, (1, H), dtype=jnp.float32) * 0.1
    w2 = jax.random.normal(k_w2, (H, Dout), dtype=jnp.float32) * 0.1
    b2 = jax.random.normal(k_b2, (1, Dout), dtype=jnp.float32) * 0.1

    fwd = make_ddp_overlap_forward(w1, b1, w2, b2)      # resident-weights path
    out = fwd(x)
    jax.block_until_ready(out)
    ref = reference_forward(x, w1, b1, w2, b2)
    assert out.shape == (B, Dout)
    assert out.dtype == x.dtype
    assert jnp.allclose(out, ref, atol=1e-2, rtol=1e-2), "resident path mismatch"

    # Also exercise the K/N-streamed path (auto-selected for production-size
    # weights, e.g. on v7x's 64 MiB VMEM) at small, fully aligned shapes.
    B2, Din2, H2, Dout2 = 64, 256, 384, 256
    x2 = jax.random.normal(k_x2, (B2, Din2), dtype=jnp.float32)
    w3 = jax.random.normal(k_w3, (Din2, H2), dtype=jnp.float32) * 0.05
    b3 = jax.random.normal(k_b3, (1, H2), dtype=jnp.float32) * 0.05
    w4 = jax.random.normal(k_w4, (H2, Dout2), dtype=jnp.float32) * 0.05
    b4 = jax.random.normal(k_b4, (1, Dout2), dtype=jnp.float32) * 0.05
    fwd_s = make_ddp_overlap_forward(w3, b3, w4, b4, force_streamed=True)
    out2 = fwd_s(x2)
    jax.block_until_ready(out2)
    ref2 = reference_forward(x2, w3, b3, w4, b4)
    assert out2.shape == (B2, Dout2)
    assert jnp.allclose(out2, ref2, atol=2e-2, rtol=2e-2), "streamed path mismatch"

    print("KERNEL_OK")
</pallas_src>

<mosaic_0001>
module attributes {stable_mosaic.version = 11 : i64} {
  func.func @_mlp_resident_kernel(%arg0: i32, %arg1: memref<16x128xbf16, #tpu.memory_space<vmem>>, %arg2: memref<128x128xbf16, #tpu.memory_space<vmem>>, %arg3: memref<1x128xf32, #tpu.memory_space<vmem>>, %arg4: memref<128x128xbf16, #tpu.memory_space<vmem>>, %arg5: memref<1x128xf32, #tpu.memory_space<vmem>>, %arg6: memref<16x128xf32, #tpu.memory_space<vmem>>) attributes {dimension_semantics = [#tpu.dimension_semantics<parallel>], iteration_bounds = array<i64: 1>, scalar_prefetch = 0 : i64, scratch_operands = 0 : i64, tpu.core_type = #tpu.core_type<tc>, window_params = [{transform_indices = @transform_0, window_bounds = array<i64: 16, 128>}, {pipeline_mode = #tpu.pipeline_mode<synchronous>, transform_indices = @transform_1, window_bounds = array<i64: 128, 128>}, {pipeline_mode = #tpu.pipeline_mode<synchronous>, transform_indices = @transform_2, window_bounds = array<i64: 1, 128>}, {pipeline_mode = #tpu.pipeline_mode<synchronous>, transform_indices = @transform_3, window_bounds = array<i64: 128, 128>}, {pipeline_mode = #tpu.pipeline_mode<synchronous>, transform_indices = @transform_4, window_bounds = array<i64: 1, 128>}, {transform_indices = @transform_5, window_bounds = array<i64: 16, 128>}]} {
    %c0 = arith.constant 0 : index
    %c0_0 = arith.constant 0 : index
    %0 = vector.load %arg1[%c0, %c0_0] : memref<16x128xbf16, #tpu.memory_space<vmem>>, vector<16x128xbf16>
    %c0_1 = arith.constant 0 : index
    %c0_2 = arith.constant 0 : index
    %1 = vector.load %arg2[%c0_1, %c0_2] : memref<128x128xbf16, #tpu.memory_space<vmem>>, vector<128x128xbf16>
    %cst = arith.constant dense<0.000000e+00> : vector<16x128xf32>
    %2 = tpu.matmul %0, %1, %cst {dimension_numbers = #tpu.dot_dimension_numbers<[1], [0], [0], [1], [0, 0, 1, 1], [], []>} : vector<16x128xbf16>, vector<128x128xbf16>, vector<16x128xf32> -> vector<16x128xf32>
    %c0_3 = arith.constant 0 : index
    %c0_4 = arith.constant 0 : index
    %3 = vector.load %arg3[%c0_3, %c0_4] : memref<1x128xf32, #tpu.memory_space<vmem>>, vector<1x128xf32>
    %4 = vector.broadcast %3 : vector<1x128xf32> to vector<16x128xf32>
    %5 = arith.addf %2, %4 : vector<16x128xf32>
    %cst_5 = arith.constant 0.000000e+00 : f32
    %6 = vector.broadcast %cst_5 : f32 to vector<16x128xf32>
    %7 = arith.maximumf %5, %6 : vector<16x128xf32>
    %8 = arith.truncf %7 : vector<16x128xf32> to vector<16x128xbf16>
    %c0_6 = arith.constant 0 : index
    %c0_7 = arith.constant 0 : index
    %9 = vector.load %arg4[%c0_6, %c0_7] : memref<128x128xbf16, #tpu.memory_space<vmem>>, vector<128x128xbf16>
    %cst_8 = arith.constant dense<0.000000e+00> : vector<16x128xf32>
    %10 = tpu.matmul %8, %9, %cst_8 {dimension_numbers = #tpu.dot_dimension_numbers<[1], [0], [0], [1], [0, 0, 1, 1], [], []>} : vector<16x128xbf16>, vector<128x128xbf16>, vector<16x128xf32> -> vector<16x128xf32>
    %c0_9 = arith.constant 0 : index
    %c0_10 = arith.constant 0 : index
    %11 = vector.load %arg5[%c0_9, %c0_10] : memref<1x128xf32, #tpu.memory_space<vmem>>, vector<1x128xf32>
    %12 = vector.broadcast %11 : vector<1x128xf32> to vector<16x128xf32>
    %13 = arith.addf %10, %12 : vector<16x128xf32>
    %c0_11 = arith.constant 0 : index
    %c0_12 = arith.constant 0 : index
    %14 = vector.load %arg6[%c0_11, %c0_12] : memref<16x128xf32, #tpu.memory_space<vmem>>, vector<16x128xf32>
    tpu.vector_store %arg6[%c0_11, %c0_12], %13 {strides = array<i32>} : memref<16x128xf32, #tpu.memory_space<vmem>>, vector<16x128xf32>,
    return
  }
  func.func @transform_0(%arg0: i32) -> (i32, i32) {
    %c0_i32 = arith.constant 0 : i32
    %c0_i32_0 = arith.constant 0 : i32
    return %arg0, %c0_i32 : i32, i32
  }
  func.func @transform_1(%arg0: i32) -> (i32, i32) {
    %c0_i32 = arith.constant 0 : i32
    %c0_i32_0 = arith.constant 0 : i32
    %c0_i32_1 = arith.constant 0 : i32
    return %c0_i32, %c0_i32_0 : i32, i32
  }
  func.func @transform_2(%arg0: i32) -> (i32, i32) {
    %c0_i32 = arith.constant 0 : i32
    %c0_i32_0 = arith.constant 0 : i32
    %c0_i32_1 = arith.constant 0 : i32
    return %c0_i32, %c0_i32_0 : i32, i32
  }
  func.func @transform_3(%arg0: i32) -> (i32, i32) {
    %c0_i32 = arith.constant 0 : i32
    %c0_i32_0 = arith.constant 0 : i32
    %c0_i32_1 = arith.constant 0 : i32
    return %c0_i32, %c0_i32_0 : i32, i32
  }
  func.func @transform_4(%arg0: i32) -> (i32, i32) {
    %c0_i32 = arith.constant 0 : i32
    %c0_i32_0 = arith.constant 0 : i32
    %c0_i32_1 = arith.constant 0 : i32
    return %c0_i32, %c0_i32_0 : i32, i32
  }
  func.func @transform_5(%arg0: i32) -> (i32, i32) {
    %c0_i32 = arith.constant 0 : i32
    %c0_i32_0 = arith.constant 0 : i32
    return %arg0, %c0_i32 : i32, i32
  }
}

module attributes {stable_mosaic.version = 11 : i64} {
  func.func @_mlp_resident_kernel(%arg0: i32, %arg1: memref<16x128xbf16, #tpu.memory_space<vmem>>, %arg2: memref<128x128xbf16, #tpu.memory_space<vmem>>, %arg3: memref<1x128xf32, #tpu.memory_space<vmem>>, %arg4: memref<128x128xbf16, #tpu.memory_space<vmem>>, %arg5: memref<1x128xf32, #tpu.memory_space<vmem>>, %arg6: memref<16x128xf32, #tpu.memory_space<vmem>>) attributes {dimension_semantics = [#tpu.dimension_semantics<parallel>], iteration_bounds = array<i64: 1>, scalar_prefetch = 0 : i64, scratch_operands = 0 : i64, tpu.core_type = #tpu.core_type<tc>, window_params = [{transform_indices = @transform_0, window_bounds = array<i64: 16, 128>}, {pipeline_mode = #tpu.pipeline_mode<synchronous>, transform_indices = @transform_1, window_bounds = array<i64: 128, 128>}, {pipeline_mode = #tpu.pipeline_mode<synchronous>, transform_indices = @transform_2, window_bounds = array<i64: 1, 128>}, {pipeline_mode = #tpu.pipeline_mode<synchronous>, transform_indices = @transform_3, window_bounds = array<i64: 128, 128>}, {pipeline_mode = #tpu.pipeline_mode<synchronous>, transform_indices = @transform_4, window_bounds = array<i64: 1, 128>}, {transform_indices = @transform_5, window_bounds = array<i64: 16, 128>}]} {
    %c0 = arith.constant 0 : index
    %c0_0 = arith.constant 0 : index
    %0 = vector.load %arg1[%c0, %c0_0] : memref<16x128xbf16, #tpu.memory_space<vmem>>, vector<16x128xbf16>
    %c0_1 = arith.constant 0 : index
    %c0_2 = arith.constant 0 : index
    %1 = vector.load %arg2[%c0_1, %c0_2] : memref<128x128xbf16, #tpu.memory_space<vmem>>, vector<128x128xbf16>
    %cst = arith.constant dense<0.000000e+00> : vector<16x128xf32>
    %2 = tpu.matmul %0, %1, %cst {dimension_numbers = #tpu.dot_dimension_numbers<[1], [0], [0], [1], [0, 0, 1, 1], [], []>} : vector<16x128xbf16>, vector<128x128xbf16>, vector<16x128xf32> -> vector<16x128xf32>
    %c0_3 = arith.constant 0 : index
    %c0_4 = arith.constant 0 : index
    %3 = vector.load %arg3[%c0_3, %c0_4] : memref<1x128xf32, #tpu.memory_space<vmem>>, vector<1x128xf32>
    %4 = vector.broadcast %3 : vector<1x128xf32> to vector<16x128xf32>
    %5 = arith.addf %2, %4 : vector<16x128xf32>
    %cst_5 = arith.constant 0.000000e+00 : f32
    %6 = vector.broadcast %cst_5 : f32 to vector<16x128xf32>
    %7 = arith.maximumf %5, %6 : vector<16x128xf32>
    %8 = arith.truncf %7 : vector<16x128xf32> to vector<16x128xbf16>
    %c0_6 = arith.constant 0 : index
    %c0_7 = arith.constant 0 : index
    %9 = vector.load %arg4[%c0_6, %c0_7] : memref<128x128xbf16, #tpu.memory_space<vmem>>, vector<128x128xbf16>
    %cst_8 = arith.constant dense<0.000000e+00> : vector<16x128xf32>
    %10 = tpu.matmul %8, %9, %cst_8 {dimension_numbers = #tpu.dot_dimension_numbers<[1], [0], [0], [1], [0, 0, 1, 1], [], []>} : vector<16x128xbf16>, vector<128x128xbf16>, vector<16x128xf32> -> vector<16x128xf32>
    %c0_9 = arith.constant 0 : index
    %c0_10 = arith.constant 0 : index
    %11 = vector.load %arg5[%c0_9, %c0_10] : memref<1x128xf32, #tpu.memory_space<vmem>>, vector<1x128xf32>
    %12 = vector.broadcast %11 : vector<1x128xf32> to vector<16x128xf32>
    %13 = arith.addf %10, %12 : vector<16x128xf32>
    %c0_11 = arith.constant 0 : index
    %c0_12 = arith.constant 0 : index
    %14 = vector.load %arg6[%c0_11, %c0_12] : memref<16x128xf32, #tpu.memory_space<vmem>>, vector<16x128xf32>
    tpu.vector_store %arg6[%c0_11, %c0_12], %13 {strides = array<i32>} : memref<16x128xf32, #tpu.memory_space<vmem>>, vector<16x128xf32>,
    return
  }
  func.func @transform_0(%arg0: i32) -> (i32, i32) {
    %c0_i32 = arith.constant 0 : i32
    %c0_i32_0 = arith.constant 0 : i32
    return %arg0, %c0_i32 : i32, i32
  }
  func.func @transform_1(%arg0: i32) -> (i32, i32) {
    %c0_i32 = arith.constant 0 : i32
    %c0_i32_0 = arith.constant 0 : i32
    %c0_i32_1 = arith.constant 0 : i32
    return %c0_i32, %c0_i32_0 : i32, i32
  }
  func.func @transform_2(%arg0: i32) -> (i32, i32) {
    %c0_i32 = arith.constant 0 : i32
    %c0_i32_0 = arith.constant 0 : i32
    %c0_i32_1 = arith.constant 0 : i32
    return %c0_i32, %c0_i32_0 : i32, i32
  }
  func.func @transform_3(%arg0: i32) -> (i32, i32) {
    %c0_i32 = arith.constant 0 : i32
    %c0_i32_0 = arith.constant 0 : i32
    %c0_i32_1 = arith.constant 0 : i32
    return %c0_i32, %c0_i32_0 : i32, i32
  }
  func.func @transform_4(%arg0: i32) -> (i32, i32) {
    %c0_i32 = arith.constant 0 : i32
    %c0_i32_0 = arith.constant 0 : i32
    %c0_i32_1 = arith.constant 0 : i32
    return %c0_i32, %c0_i32_0 : i32, i32
  }
  func.func @transform_5(%arg0: i32) -> (i32, i32) {
    %c0_i32 = arith.constant 0 : i32
    %c0_i32_0 = arith.constant 0 : i32
    return %arg0, %c0_i32 : i32, i32
  }
}

</mosaic_0001>

<bundles_post_ra>
// kernel: tpu_custom_call.1
= control target key start
LH: loop header
LB: loop body
LE: loop exit
PB: predicated region body
PF: predicated region fallthrough
CT: control target
= control target key end

     0   :  { %10 = vsyncpa [#allocation3], 0  ;;  %s518_s0 = inlined_call_operand.hbm [shape: bf16[16,128], index: 0, kind: input, shape index: {}]   ;;  %s519_s1 = inlined_call_operand.hbm [shape: bf16[128,128], index: 1, kind: input, shape index: {}]   ;;  %s520_s2 = inlined_call_operand.vmem [shape: f32[1,128], index: 2, kind: input, shape index: {}]   ;;  %s521_s3 = inlined_call_operand.hbm [shape: bf16[128,128], index: 3, kind: input, shape index: {}]   ;;  %s522_s4 = inlined_call_operand.vmem [shape: f32[1,128], index: 4, kind: input, shape index: {}]   ;;  %s523_s5 = inlined_call_operand.hbm [shape: f32[16,128], index: 5, kind: output, shape index: {}]  }
   0x1   :  { %11 = vsyncpa [#allocation6], 0 }
   0x2   :  { %12 = vsyncpa [#allocation4], 0  ;;  %s30_s20 = sshll.u32 %s519_s1, 4  ;;  %s462_s21 = smov [#allocation5]   ;;  %s31_s20 = int_to_ptr.hbm [resolvable:$true] %s30_s20 }
   0x3   :  { %s32_s22 = sshll.u32 %s462_s21, 4  ;;  %s17_s25 = sshll.u32 %s518_s0, 4  ;;  %s33_s22 = int_to_ptr.vmem [resolvable:$true] %s32_s22  ;;  %s18_s25 = int_to_ptr.hbm [resolvable:$true] %s17_s25 }
   0x4   :  { %s463_s26 = smov 64   ;;  %s464_s27 = smov 4  }
   0x5   :  { %38 = dma.hbm_to_vmem [thread:$0]  %s31_s20, 1024, %s33_s22, [#allocation6], %s463_s26, %s463_s26, %s464_s27  }
   0x6   :  { %s465_s28 = smov [#allocation2]   ;;  %s45_s7 = sshll.u32 %s521_s3, 4  ;;  %s46_s7 = int_to_ptr.hbm [resolvable:$true] %s45_s7 }
   0x7   :  { %s19_s29 = sshll.u32 %s465_s28, 4  ;;  %s466_s1 = smov [#allocation7]   ;;  %s20_s29 = int_to_ptr.vmem [resolvable:$true] %s19_s29 }
   0x8   :  { %25 = dma.hbm_to_vmem [thread:$0]  %s18_s25, 128, %s20_s29, [#allocation3], %s463_s26, %s463_s26, %s464_s27  }
   0x9   :  { %s47_s8 = sshll.u32 %s466_s1, 4  ;;  %s48_s8 = int_to_ptr.vmem [resolvable:$true] %s47_s8 }
   0xa   :  { %53 = dma.hbm_to_vmem [thread:$0]  %s46_s7, 1024, %s48_s8, [#allocation6], %s463_s26, %s463_s26, %s464_s27  }
   0xb   :  { %456 = dma.done.wait [#allocation3], 128  }
   0xc   :  { %457 = vsyncadd [#allocation3], 4294967168 }
   0xd   :  { %458 = dma.done.wait [#allocation6], 2048  }
   0xe   :  { %459 = vsyncadd [#allocation6], 4294965248  ;;  %v341_v0 = vld [vmem:[#allocation5 + $0x38] sm:$0xff]  ;;  %v340_v1 = vld [vmem:[#allocation5 + $0x30] sm:$0xff]  ;;  %s467_s11 = smov [#allocation8]   ;;  %s468_s15 = smov 128  }
   0xf   :  { %144 = vmatpush.bf16.msra.mxu0 %v341_v0  ;;  %v349_v2 = vld [vmem:[#allocation7 + $0x38] sm:$0xff]  ;;  %v348_v3 = vld [vmem:[#allocation7 + $0x30] sm:$0xff]  ;;  %v339_v4 = vld [vmem:[#allocation5 + $0x28] sm:$0xff]  ;;  %s249_s12 = sshll.u32 %s467_s11, 4  ;;  %s469_s16 = smov 8   ;;  %s250_s12 = int_to_ptr.vmem [resolvable:$true] %s249_s12 }
  0x10   :  { %229 = vmatpush.bf16.msra.mxu1 %v349_v2  ;;  %v347_v5 = vld [vmem:[#allocation7 + $0x28] sm:$0xff]  ;;  %v338_v6 = vld [vmem:[#allocation5 + $0x20] sm:$0xff]  ;;  %v337_v8 = vld [vmem:[#allocation5 + $0x18] sm:$0xff] }
  0x11   :  { %v346_v7 = vld [vmem:[#allocation7 + $0x20] sm:$0xff]  ;;  %v336_v9 = vld [vmem:[#allocation5 + $0x10] sm:$0xff]  ;;  %v335_v10 = vld [vmem:[#allocation5 + $0x8] sm:$0xff] }
  0x12   :  { %v334_v11 = vld [vmem:[#allocation5] sm:$0xff]  ;;  %v333_v12 = vld [vmem:[#allocation2] sm:$0xff]  ;;  %v344_v14 = vld [vmem:[#allocation7 + $0x10] sm:$0xff] }
  0x13   :  { %145 = vmatpush.bf16.msra.mxu0 %v340_v1  ;;  %v345_v13 = vld [vmem:[#allocation7 + $0x18] sm:$0xff]  ;;  %v343_v15 = vld [vmem:[#allocation7 + $0x8] sm:$0xff]  ;;  %v342_v16 = vld [vmem:[#allocation7] sm:$0xff] }
  0x14   :  { %230 = vmatpush.bf16.msra.mxu1 %v348_v3  ;;  %v358_v18 = vld [vmem:[%s520_s2] ss:$0 sm:$0xff]  ;;  %s251_s2 = sshll.u32 %s523_s5, 4  ;;  %s252_s2 = int_to_ptr.hbm [resolvable:$true] %s251_s2 }
  0x15   :  { %v359_v25 = vld [vmem:[%s522_s4] ss:$0 sm:$0xff] }
  0x17   :  { %146 = vmatpush.bf16.msra.mxu0 %v339_v4 }
  0x18   :  { %231 = vmatpush.bf16.msra.mxu1 %v347_v5 }
  0x1b   :  { %147 = vmatpush.bf16.msra.mxu0 %v338_v6 }
  0x1c   :  { %232 = vmatpush.bf16.msra.mxu1 %v346_v7 }
  0x1f   :  { %148 = vmatpush.bf16.msra.mxu0 %v337_v8 }
  0x20   :  { %233 = vmatpush.bf16.msra.mxu1 %v345_v13 }
  0x23   :  { %149 = vmatpush.bf16.msra.mxu0 %v336_v9 }
  0x24   :  { %234 = vmatpush.bf16.msra.mxu1 %v344_v14 }
  0x27   :  { %150 = vmatpush.bf16.msra.mxu0 %v335_v10 }
  0x28   :  { %235 = vmatpush.bf16.msra.mxu1 %v343_v15 }
  0x2b   :  { %151 = vmatpush.bf16.msra.mxu0 %v334_v11 }
  0x2c   :  { %236 = vmatpush.bf16.msra.mxu1 %v342_v16 }
  0x2e   :  { %152 = vmatmul.bf16.vlgmr.msra.gmra.mxu0 %v333_v12 }
  0xab   :  { %v153_v17 = vpop.f32.mrf.mxu0 }
  0xac   :  { %v154_v19 = vadd.f32 %v358_v18, %v153_v17 }
  0xae   :  { %v158_v22 = vmax.f32 %v154_v19, 0.0 }
  0xb3   :  { %v155_v20 = vpop.f32.mrf.mxu0 }
  0xb4   :  { %v156_v21 = vadd.f32 %v358_v18, %v155_v20 }
  0xb6   :  { %v159_v23 = vmax.f32 %v156_v21, 0.0 }
  0xb8   :  { %v160_v24 = vpack.c.bf16 %v159_v23, %v158_v22 }
  0xba   :  { %237 = vmatmul.bf16.vlgmr.msra.gmra.mxu1 %v160_v24 }
 0x137   :  { %v238_v26 = vpop.f32.mrf.mxu1 }
 0x138   :  { %v239_v27 = vadd.f32 %v359_v25, %v238_v26 }
 0x13a   :  { %243 = vst [vmem:[#allocation8] sm:$0xff] %v239_v27 }
 0x13f   :  { %v240_v28 = vpop.f32.mrf.mxu1 }
 0x140   :  { %v241_v29 = vadd.f32 %v359_v25, %v240_v28 }
 0x142   :  { %244 = vst [vmem:[#allocation8 + $0x8] sm:$0xff] %v241_v29 }
 0x143   :  { %257 = dma.vmem_to_hbm [thread:$0]  %s250_s12, 256, %s252_s2, [#allocation4], %s468_s15, %s468_s15, %s469_s16  }
 0x144   :  { %460 = dma.done.wait [#allocation4], 256  }
 0x145   :  { %461 = vsyncadd [#allocation4], 4294967040 }
 0x146   :  { %262 = vsyncpa [#allocation3], 1 }
 0x147   :  { %263 = vsyncpa [#allocation6], 1 }
 0x148   :  { %264 = vsyncpa [#allocation4], 1 }

// kernel: tpu_custom_call.1
= control target key start
LH: loop header
LB: loop body
LE: loop exit
PB: predicated region body
PF: predicated region fallthrough
CT: control target
= control target key end

     0   :  { %10 = vsyncpa [#allocation3], 0  ;;  %s518_s0 = inlined_call_operand.hbm [shape: bf16[16,128], index: 0, kind: input, shape index: {}]   ;;  %s519_s1 = inlined_call_operand.hbm [shape: bf16[128,128], index: 1, kind: input, shape index: {}]   ;;  %s520_s2 = inlined_call_operand.vmem [shape: f32[1,128], index: 2, kind: input, shape index: {}]   ;;  %s521_s3 = inlined_call_operand.hbm [shape: bf16[128,128], index: 3, kind: input, shape index: {}]   ;;  %s522_s4 = inlined_call_operand.vmem [shape: f32[1,128], index: 4, kind: input, shape index: {}]   ;;  %s523_s5 = inlined_call_operand.hbm [shape: f32[16,128], index: 5, kind: output, shape index: {}]  }
   0x1   :  { %11 = vsyncpa [#allocation6], 0 }
   0x2   :  { %12 = vsyncpa [#allocation4], 0  ;;  %s30_s20 = sshll.u32 %s519_s1, 4  ;;  %s462_s21 = smov [#allocation5]   ;;  %s31_s20 = int_to_ptr.hbm [resolvable:$true] %s30_s20 }
   0x3   :  { %s32_s22 = sshll.u32 %s462_s21, 4  ;;  %s17_s25 = sshll.u32 %s518_s0, 4  ;;  %s33_s22 = int_to_ptr.vmem [resolvable:$true] %s32_s22  ;;  %s18_s25 = int_to_ptr.hbm [resolvable:$true] %s17_s25 }
   0x4   :  { %s463_s26 = smov 64   ;;  %s464_s27 = smov 4  }
   0x5   :  { %38 = dma.hbm_to_vmem [thread:$0]  %s31_s20, 1024, %s33_s22, [#allocation6], %s463_s26, %s463_s26, %s464_s27  }
   0x6   :  { %s465_s28 = smov [#allocation2]   ;;  %s45_s7 = sshll.u32 %s521_s3, 4  ;;  %s46_s7 = int_to_ptr.hbm [resolvable:$true] %s45_s7 }
   0x7   :  { %s19_s29 = sshll.u32 %s465_s28, 4  ;;  %s466_s1 = smov [#allocation7]   ;;  %s20_s29 = int_to_ptr.vmem [resolvable:$true] %s19_s29 }
   0x8   :  { %25 = dma.hbm_to_vmem [thread:$0]  %s18_s25, 128, %s20_s29, [#allocation3], %s463_s26, %s463_s26, %s464_s27  }
   0x9   :  { %s47_s8 = sshll.u32 %s466_s1, 4  ;;  %s48_s8 = int_to_ptr.vmem [resolvable:$true] %s47_s8 }
   0xa   :  { %53 = dma.hbm_to_vmem [thread:$0]  %s46_s7, 1024, %s48_s8, [#allocation6], %s463_s26, %s463_s26, %s464_s27  }
   0xb   :  { %456 = dma.done.wait [#allocation3], 128  }
   0xc   :  { %457 = vsyncadd [#allocation3], 4294967168 }
   0xd   :  { %458 = dma.done.wait [#allocation6], 2048  }
   0xe   :  { %459 = vsyncadd [#allocation6], 4294965248  ;;  %v341_v0 = vld [vmem:[#allocation5 + $0x38] sm:$0xff]  ;;  %v340_v1 = vld [vmem:[#allocation5 + $0x30] sm:$0xff]  ;;  %s467_s11 = smov [#allocation8]   ;;  %s468_s15 = smov 128  }
   0xf   :  { %144 = vmatpush.bf16.msra.mxu0 %v341_v0  ;;  %v349_v2 = vld [vmem:[#allocation7 + $0x38] sm:$0xff]  ;;  %v348_v3 = vld [vmem:[#allocation7 + $0x30] sm:$0xff]  ;;  %v339_v4 = vld [vmem:[#allocation5 + $0x28] sm:$0xff]  ;;  %s249_s12 = sshll.u32 %s467_s11, 4  ;;  %s469_s16 = smov 8   ;;  %s250_s12 = int_to_ptr.vmem [resolvable:$true] %s249_s12 }
  0x10   :  { %229 = vmatpush.bf16.msra.mxu1 %v349_v2  ;;  %v347_v5 = vld [vmem:[#allocation7 + $0x28] sm:$0xff]  ;;  %v338_v6 = vld [vmem:[#allocation5 + $0x20] sm:$0xff]  ;;  %v337_v8 = vld [vmem:[#allocation5 + $0x18] sm:$0xff] }
  0x11   :  { %v346_v7 = vld [vmem:[#allocation7 + $0x20] sm:$0xff]  ;;  %v336_v9 = vld [vmem:[#allocation5 + $0x10] sm:$0xff]  ;;  %v335_v10 = vld [vmem:[#allocation5 + $0x8] sm:$0xff] }
  0x12   :  { %v334_v11 = vld [vmem:[#allocation5] sm:$0xff]  ;;  %v333_v12 = vld [vmem:[#allocation2] sm:$0xff]  ;;  %v344_v14 = vld [vmem:[#allocation7 + $0x10] sm:$0xff] }
  0x13   :  { %145 = vmatpush.bf16.msra.mxu0 %v340_v1  ;;  %v345_v13 = vld [vmem:[#allocation7 + $0x18] sm:$0xff]  ;;  %v343_v15 = vld [vmem:[#allocation7 + $0x8] sm:$0xff]  ;;  %v342_v16 = vld [vmem:[#allocation7] sm:$0xff] }
  0x14   :  { %230 = vmatpush.bf16.msra.mxu1 %v348_v3  ;;  %v358_v18 = vld [vmem:[%s520_s2] ss:$0 sm:$0xff]  ;;  %s251_s2 = sshll.u32 %s523_s5, 4  ;;  %s252_s2 = int_to_ptr.hbm [resolvable:$true] %s251_s2 }
  0x15   :  { %v359_v25 = vld [vmem:[%s522_s4] ss:$0 sm:$0xff] }
  0x17   :  { %146 = vmatpush.bf16.msra.mxu0 %v339_v4 }
  0x18   :  { %231 = vmatpush.bf16.msra.mxu1 %v347_v5 }
  0x1b   :  { %147 = vmatpush.bf16.msra.mxu0 %v338_v6 }
  0x1c   :  { %232 = vmatpush.bf16.msra.mxu1 %v346_v7 }
  0x1f   :  { %148 = vmatpush.bf16.msra.mxu0 %v337_v8 }
  0x20   :  { %233 = vmatpush.bf16.msra.mxu1 %v345_v13 }
  0x23   :  { %149 = vmatpush.bf16.msra.mxu0 %v336_v9 }
  0x24   :  { %234 = vmatpush.bf16.msra.mxu1 %v344_v14 }
  0x27   :  { %150 = vmatpush.bf16.msra.mxu0 %v335_v10 }
  0x28   :  { %235 = vmatpush.bf16.msra.mxu1 %v343_v15 }
  0x2b   :  { %151 = vmatpush.bf16.msra.mxu0 %v334_v11 }
  0x2c   :  { %236 = vmatpush.bf16.msra.mxu1 %v342_v16 }
  0x2e   :  { %152 = vmatmul.bf16.vlgmr.msra.gmra.mxu0 %v333_v12 }
  0xab   :  { %v153_v17 = vpop.f32.mrf.mxu0 }
  0xac   :  { %v154_v19 = vadd.f32 %v358_v18, %v153_v17 }
  0xae   :  { %v158_v22 = vmax.f32 %v154_v19, 0.0 }
  0xb3   :  { %v155_v20 = vpop.f32.mrf.mxu0 }
  0xb4   :  { %v156_v21 = vadd.f32 %v358_v18, %v155_v20 }
  0xb6   :  { %v159_v23 = vmax.f32 %v156_v21, 0.0 }
  0xb8   :  { %v160_v24 = vpack.c.bf16 %v159_v23, %v158_v22 }
  0xba   :  { %237 = vmatmul.bf16.vlgmr.msra.gmra.mxu1 %v160_v24 }
 0x137   :  { %v238_v26 = vpop.f32.mrf.mxu1 }
 0x138   :  { %v239_v27 = vadd.f32 %v359_v25, %v238_v26 }
 0x13a   :  { %243 = vst [vmem:[#allocation8] sm:$0xff] %v239_v27 }
 0x13f   :  { %v240_v28 = vpop.f32.mrf.mxu1 }
 0x140   :  { %v241_v29 = vadd.f32 %v359_v25, %v240_v28 }
 0x142   :  { %244 = vst [vmem:[#allocation8 + $0x8] sm:$0xff] %v241_v29 }
 0x143   :  { %257 = dma.vmem_to_hbm [thread:$0]  %s250_s12, 256, %s252_s2, [#allocation4], %s468_s15, %s468_s15, %s469_s16  }
 0x144   :  { %460 = dma.done.wait [#allocation4], 256  }
 0x145   :  { %461 = vsyncadd [#allocation4], 4294967040 }
 0x146   :  { %262 = vsyncpa [#allocation3], 1 }
 0x147   :  { %263 = vsyncpa [#allocation6], 1 }
 0x148   :  { %264 = vsyncpa [#allocation4], 1 }

</bundles_post_ra>
